<compile_context>
chip_gen: v5e
topology: v5e:2x2
jax: 0.10.0
libtpu: 0.0.40
codegen_flags: <defaults>
</compile_context>

<pallas_src>
import jax
import jax.numpy as jnp
from jax.experimental import pallas as pl
from jax.experimental.pallas import tpu as pltpu

_LANE = 128
_BN_EPS = 1e-5
_STAT_ROWS = 8                      # sublane-aligned stats block (rows 0/1 used)
_N_STAT_SHARDS = 2                  # per-core partial stats (v7x megacore)
_VMEM_LIMIT = 48 * 1024 * 1024      # headroom below v7x's 64 MiB physical VMEM


def _round_up(v, m):
    return (v + m - 1) // m * m


def _pad2(a, rows, cols):
    return jnp.pad(a, ((0, rows - a.shape[0]), (0, cols - a.shape[1])))


# ----------------------------------------------------------------------------
# Pass 1 (stats only): h = x @ W1 in VMEM, accumulate per-feature sum / sumsq
# into a resident (8, d_mid) accumulator block per grid shard.  h is NOT
# written to HBM.
# ----------------------------------------------------------------------------
def _pass1_kernel(x_ref, w1_ref, stats_ref):
    @pl.when(pl.program_id(1) == 0)
    def _init():
        stats_ref[...] = jnp.zeros_like(stats_ref)

    h = jnp.dot(x_ref[...], w1_ref[...], preferred_element_type=jnp.float32)
    # Rows 0/1 of the (8, d_mid) accumulator hold sum and sum-of-squares.
    # (Two 1-row RMW stores per step; negligible next to the block matmul.)
    stats_ref[0:1, :] = stats_ref[0:1, :] + jnp.sum(h, axis=0, keepdims=True)
    stats_ref[1:2, :] = stats_ref[1:2, :] + jnp.sum(h * h, axis=0, keepdims=True)


# ----------------------------------------------------------------------------
# Pass 2: recompute h = x @ W1 (identical bf16/f32 math as pass 1), apply the
# pre-folded BatchNorm scale/shift + ReLU, then the second Linear.
# ----------------------------------------------------------------------------
def _pass2_kernel(x_ref, w1_ref, scale_ref, shift_ref, w2_ref, b2_ref, o_ref):
    h = jnp.dot(x_ref[...], w1_ref[...], preferred_element_type=jnp.float32)
    hn = jnp.maximum(h * scale_ref[...] + shift_ref[...], 0.0)   # folded BN + ReLU
    y = jnp.dot(hn.astype(jnp.bfloat16), w2_ref[...],
                preferred_element_type=jnp.float32) + b2_ref[...]
    o_ref[...] = y.astype(o_ref.dtype)


def prediction_mlp(x, w1, gamma, beta, w2, b2, *, block_n=512):
    n, in_dim = x.shape
    mid_dim = w1.shape[1]
    out_dim = w2.shape[1]

    d_in = _round_up(in_dim, _LANE)
    d_mid = _round_up(mid_dim, _LANE)
    d_out = _round_up(out_dim, _LANE)

    # bf16 streams pack two rows per sublane -> batch blocks multiple of 16.
    bn = _round_up(min(block_n, _round_up(n, 16)), 16)
    # Even number of row blocks so pass 1 can shard 2-way across TensorCores.
    n_pad = _round_up(n, _N_STAT_SHARDS * bn)
    n_blocks = n_pad // bn
    half = n_blocks // _N_STAT_SHARDS

    # Lane-dense, zero-padded operands.  Zero batch rows contribute nothing to
    # the BN statistics; zero weight rows/cols contribute nothing to the matmuls.
    x_p = _pad2(x, n_pad, d_in).astype(jnp.bfloat16)      # bf16 MXU operand
    w1_p = _pad2(w1, d_in, d_mid).astype(jnp.bfloat16)
    w2_p = _pad2(w2, d_mid, d_out).astype(jnp.bfloat16)
    gamma_p = _pad2(gamma, 1, d_mid).astype(jnp.float32)
    beta_p = _pad2(beta, 1, d_mid).astype(jnp.float32)
    b2_p = _pad2(b2, 1, d_out).astype(jnp.float32)

    # --- Pass 1: per-shard (sum, sumsq) over the batch -----------------------
    stats = pl.pallas_call(
        _pass1_kernel,
        grid=(_N_STAT_SHARDS, half),
        in_specs=[
            pl.BlockSpec((bn, d_in), lambda c, i: (c * half + i, 0)),   # streams
            pl.BlockSpec((d_in, d_mid), lambda c, i: (0, 0)),           # resident W1
        ],
        out_specs=pl.BlockSpec((_STAT_ROWS, d_mid), lambda c, i: (c, 0)),
        out_shape=jax.ShapeDtypeStruct((_N_STAT_SHARDS * _STAT_ROWS, d_mid),
                                       jnp.float32),
        compiler_params=pltpu.CompilerParams(
            dimension_semantics=("parallel", "arbitrary"),
            vmem_limit_bytes=_VMEM_LIMIT),
    )(x_p, w1_p)

    # --- Fold BatchNorm into per-feature scale/shift (tiny XLA op) ------------
    # Note: var = E[h^2] - E[h]^2 with f32 accumulation; for |mean| >> std or
    # very large n a shifted-sumsq / two-pass variance would be more robust.
    inv_n = jnp.float32(1.0 / n)
    st = stats.reshape(_N_STAT_SHARDS, _STAT_ROWS, d_mid).sum(axis=0)
    mean = st[0:1, :] * inv_n
    var = jnp.maximum(st[1:2, :] * inv_n - mean * mean, 0.0)
    scale = gamma_p * jax.lax.rsqrt(var + _BN_EPS)
    shift = beta_p - mean * scale

    # --- Pass 2: recompute x@W1, folded BN + ReLU, second Linear --------------
    out = pl.pallas_call(
        _pass2_kernel,
        grid=(n_blocks,),
        in_specs=[
            pl.BlockSpec((bn, d_in), lambda i: (i, 0)),        # streams
            pl.BlockSpec((d_in, d_mid), lambda i: (0, 0)),     # resident W1
            pl.BlockSpec((1, d_mid), lambda i: (0, 0)),
            pl.BlockSpec((1, d_mid), lambda i: (0, 0)),
            pl.BlockSpec((d_mid, d_out), lambda i: (0, 0)),    # resident W2
            pl.BlockSpec((1, d_out), lambda i: (0, 0)),
        ],
        out_specs=pl.BlockSpec((bn, d_out), lambda i: (i, 0)),
        out_shape=jax.ShapeDtypeStruct((n_pad, d_out), jnp.float32),
        compiler_params=pltpu.CompilerParams(
            dimension_semantics=("parallel",),
            vmem_limit_bytes=_VMEM_LIMIT),
    )(x_p, w1_p, scale, shift, w2_p, b2_p)

    return out[:n, :out_dim]


if __name__ == "__main__":
    # Small shapes consistent with the module: batch=8, in=32, mid=64, out=32.
    N, IN_DIM, MID_DIM, OUT_DIM = 8, 32, 64, 32

    key = jax.random.PRNGKey(0)
    kx, k1, k2, k3, k4 = jax.random.split(key, 5)
    x = jax.random.normal(kx, (N, IN_DIM), jnp.float32)

    # PyTorch nn.Linear-style init; weights stored (in_features, out_features).
    lim1 = 1.0 / jnp.sqrt(IN_DIM)
    lim2 = 1.0 / jnp.sqrt(MID_DIM)
    w1 = jax.random.uniform(k1, (IN_DIM, MID_DIM), jnp.float32, -lim1, lim1)
    b1 = jax.random.uniform(k2, (1, MID_DIM), jnp.float32, -lim1, lim1)
    w2 = jax.random.uniform(k3, (MID_DIM, OUT_DIM), jnp.float32, -lim2, lim2)
    b2 = jax.random.uniform(k4, (1, OUT_DIM), jnp.float32, -lim2, lim2)
    gamma = jnp.ones((1, MID_DIM), jnp.float32)   # BatchNorm1d affine at init
    beta = jnp.zeros((1, MID_DIM), jnp.float32)

    out = prediction_mlp(x, w1, gamma, beta, w2, b2)
    jax.block_until_ready(out)
    assert out.shape == (N, OUT_DIM)

    # Reference A: exact PyTorch-equivalent f32 math (includes b1, two-pass var).
    h = x @ w1 + b1
    mean = h.mean(0, keepdims=True)
    var = ((h - mean) ** 2).mean(0, keepdims=True)
    hn = (h - mean) / jnp.sqrt(var + _BN_EPS) * gamma + beta
    ref_f32 = jnp.maximum(hn, 0.0) @ w2 + b2

    # Reference B: kernel-matched math (bf16 MXU operands, b1 dropped -- it is
    # exactly cancelled by the batch-mean subtraction, sum/sumsq variance,
    # folded scale/shift).
    hb = jnp.dot(x.astype(jnp.bfloat16), w1.astype(jnp.bfloat16),
                 preferred_element_type=jnp.float32)
    mb = hb.mean(0, keepdims=True)
    vb = jnp.maximum((hb * hb).mean(0, keepdims=True) - mb * mb, 0.0)
    sc = gamma * jax.lax.rsqrt(vb + _BN_EPS)
    sh = beta - mb * sc
    hnb = jnp.maximum(hb * sc + sh, 0.0)
    ref_bf16 = jnp.dot(hnb.astype(jnp.bfloat16), w2.astype(jnp.bfloat16),
                       preferred_element_type=jnp.float32) + b2

    assert jnp.allclose(out, ref_bf16, atol=2e-3, rtol=2e-3), "mismatch vs bf16-matched reference"
    assert jnp.allclose(out, ref_f32, atol=5e-2, rtol=5e-2), "mismatch vs f32 PyTorch reference"

    print("KERNEL_OK")
</pallas_src>

<mosaic_0001>
module attributes {stable_mosaic.version = 11 : i64} {
  func.func @_pass1_kernel(%arg0: i32, %arg1: i32, %arg2: memref<16x128xbf16, #tpu.memory_space<vmem>>, %arg3: memref<128x128xbf16, #tpu.memory_space<vmem>>, %arg4: memref<8x128xf32, #tpu.memory_space<vmem>>) attributes {dimension_semantics = [#tpu.dimension_semantics<parallel>, #tpu.dimension_semantics<arbitrary>], iteration_bounds = array<i64: 2, 1>, scalar_prefetch = 0 : i64, scratch_operands = 0 : i64, tpu.core_type = #tpu.core_type<tc>, window_params = [{transform_indices = @transform_0, window_bounds = array<i64: 16, 128>}, {pipeline_mode = #tpu.pipeline_mode<synchronous>, transform_indices = @transform_1, window_bounds = array<i64: 128, 128>}, {transform_indices = @transform_2, window_bounds = array<i64: 8, 128>}]} {
    %c0_i32 = arith.constant 0 : i32
    %0 = arith.cmpi eq, %arg1, %c0_i32 : i32
    %1 = arith.extui %0 : i1 to i32
    %c0_i32_0 = arith.constant 0 : i32
    %2 = arith.cmpi ne, %1, %c0_i32_0 : i32
    scf.if %2 {
      %cst_13 = arith.constant 0.000000e+00 : f32
      %17 = vector.broadcast %cst_13 : f32 to vector<8x128xf32>
      %c0_14 = arith.constant 0 : index
      %c0_15 = arith.constant 0 : index
      %18 = vector.load %arg4[%c0_14, %c0_15] : memref<8x128xf32, #tpu.memory_space<vmem>>, vector<8x128xf32>
      tpu.vector_store %arg4[%c0_14, %c0_15], %17 {strides = array<i32>} : memref<8x128xf32, #tpu.memory_space<vmem>>, vector<8x128xf32>,
    } else {
    }
    %c0 = arith.constant 0 : index
    %c0_1 = arith.constant 0 : index
    %3 = vector.load %arg2[%c0, %c0_1] : memref<16x128xbf16, #tpu.memory_space<vmem>>, vector<16x128xbf16>
    %c0_2 = arith.constant 0 : index
    %c0_3 = arith.constant 0 : index
    %4 = vector.load %arg3[%c0_2, %c0_3] : memref<128x128xbf16, #tpu.memory_space<vmem>>, vector<128x128xbf16>
    %cst = arith.constant dense<0.000000e+00> : vector<16x128xf32>
    %5 = tpu.matmul %3, %4, %cst {dimension_numbers = #tpu.dot_dimension_numbers<[1], [0], [0], [1], [0, 0, 1, 1], [], []>} : vector<16x128xbf16>, vector<128x128xbf16>, vector<16x128xf32> -> vector<16x128xf32>
    %c0_4 = arith.constant 0 : index
    %c0_5 = arith.constant 0 : index
    %6 = vector.load %arg4[%c0_4, %c0_5] : memref<8x128xf32, #tpu.memory_space<vmem>>, vector<1x128xf32>
    %cst_6 = arith.constant dense<0.000000e+00> : vector<128xf32>
    %7 = vector.multi_reduction <add>, %5, %cst_6 [0] : vector<16x128xf32> to vector<128xf32>
    %8 = vector.shape_cast %7 : vector<128xf32> to vector<1x128xf32>
    %9 = arith.addf %6, %8 : vector<1x128xf32>
    %c0_7 = arith.constant 0 : index
    %c0_8 = arith.constant 0 : index
    %10 = vector.load %arg4[%c0_7, %c0_8] : memref<8x128xf32, #tpu.memory_space<vmem>>, vector<1x128xf32>
    tpu.vector_store %arg4[%c0_7, %c0_8], %9 {strides = array<i32>} : memref<8x128xf32, #tpu.memory_space<vmem>>, vector<1x128xf32>,
    %c1 = arith.constant 1 : index
    %c0_9 = arith.constant 0 : index
    %11 = vector.load %arg4[%c1, %c0_9] : memref<8x128xf32, #tpu.memory_space<vmem>>, vector<1x128xf32>
    %12 = arith.mulf %5, %5 : vector<16x128xf32>
    %cst_10 = arith.constant dense<0.000000e+00> : vector<128xf32>
    %13 = vector.multi_reduction <add>, %12, %cst_10 [0] : vector<16x128xf32> to vector<128xf32>
    %14 = vector.shape_cast %13 : vector<128xf32> to vector<1x128xf32>
    %15 = arith.addf %11, %14 : vector<1x128xf32>
    %c1_11 = arith.constant 1 : index
    %c0_12 = arith.constant 0 : index
    %16 = vector.load %arg4[%c1_11, %c0_12] : memref<8x128xf32, #tpu.memory_space<vmem>>, vector<1x128xf32>
    tpu.vector_store %arg4[%c1_11, %c0_12], %15 {strides = array<i32>} : memref<8x128xf32, #tpu.memory_space<vmem>>, vector<1x128xf32>,
    return
  }
  func.func @transform_0(%arg0: i32, %arg1: i32) -> (i32, i32) {
    %c1_i32 = arith.constant 1 : i32
    %0 = arith.muli %arg0, %c1_i32 : i32
    %1 = arith.addi %0, %arg1 : i32
    %c0_i32 = arith.constant 0 : i32
    %c0_i32_0 = arith.constant 0 : i32
    return %1, %c0_i32 : i32, i32
  }
  func.func @transform_1(%arg0: i32, %arg1: i32) -> (i32, i32) {
    %c0_i32 = arith.constant 0 : i32
    %c0_i32_0 = arith.constant 0 : i32
    %c0_i32_1 = arith.constant 0 : i32
    return %c0_i32, %c0_i32_0 : i32, i32
  }
  func.func @transform_2(%arg0: i32, %arg1: i32) -> (i32, i32) {
    %c0_i32 = arith.constant 0 : i32
    %c0_i32_0 = arith.constant 0 : i32
    return %arg0, %c0_i32 : i32, i32
  }
}

</mosaic_0001>

<bundles_post_ra>
// kernel: tpu_custom_call.1
= control target key start
LH: loop header
LB: loop body
LE: loop exit
PB: predicated region body
PF: predicated region fallthrough
CT: control target
= control target key end

     0   :  { %7 = vsyncpa [#allocation3], 0  ;;  %s884_s0 = inlined_call_operand.hbm [shape: bf16[32,128], index: 0, kind: input, shape index: {}]   ;;  %s885_s1 = inlined_call_operand.hbm [shape: bf16[128,128], index: 1, kind: input, shape index: {}]   ;;  %s886_s2 = inlined_call_operand.hbm [shape: f32[16,128], index: 2, kind: output, shape index: {}]  }
   0x1   :  { %9 = vsyncpa [#allocation3 + $0x1], 0 }
   0x2   :  { %10 = vsyncpa [#allocation6], 0 }
   0x3   :  { %11 = vsyncpa [#allocation4], 0 }
   0x4   :  { %13 = vsyncpa [#allocation4 + $0x1], 0  ;;  %s721_s9 = smov 0   ;;  %s723_s10 = smov 0  }
   0x5   :  { %s725_s11 = smov 0   ;;  %s727_s12 = smov 0  }
   0x6   :  { %s729_s13 = smov 0   ;;  %s731_s14 = smov 0  }
   0x7 LB: > { %s416_s15 = sadd.s32 4294967295, %s700_s14   ;;  %s417_s16 = sadd.s32 4294967294, %s700_s14   ;;  %s700_s14 = sphi %s731_s14, %s19_s14   ;;  %s696_s13 = sphi %s729_s13, %s898_s13   ;;  %s692_s12 = sphi %s727_s12, %s897_s12   ;;  %s688_s11 = sphi %s725_s11, %s896_s11   ;;  %s684_s10 = sphi %s723_s10, %s895_s10   ;;  %s680_s9 = sphi %s721_s9, %s894_s9  }
   0x8   : > { %p53_p0 = scmp.ne.s32.totalorder %s684_s10, %s680_s9  ;;  %p755_p1 = scmp.eq.s32.totalorder %s416_s15, 0 }
   0x9   : > { %p759_p2 = scmp.eq.s32.totalorder %s416_s15, 1  ;;  %p104_p3 = scmp.eq.s32.totalorder %s417_s16, 1 }
   0xa   : > { %p765_p4 = por %p755_p1, %p53_p0  ;;  %p418_p5 = scmp.ge.s32.totalorder %s700_s14, 1 }
   0xb   : > { %p770_p6 = por %p104_p3, %p53_p0  ;;  %p111_p7 = scmp.lt.s32.totalorder %s700_s14, 3 }
   0xc   : > { %s122_s23 = sshll.u32 %s885_s1, 4  ;;  %s702_s25 = smov [#allocation5]   ;;  %s123_s23 = int_to_ptr.hbm [resolvable:$true] %s122_s23 }
   0xd   : > { %p778_p8 = pnand %p418_p5, %p111_p7  ;;  %s124_s26 = sshll.u32 %s702_s25, 4  ;;  %s125_s26 = int_to_ptr.vmem [resolvable:$true] %s124_s26 }
   0xe   : > { %p420_p11 = scmp.ge.s32.totalorder %s700_s14, 2  ;;  %s703_s27 = smov 64  }
   0xf   : > { %p486_p9 = pneg %p778_p8  ;;  %s704_s28 = smov 4  }
  0x10   : > { %s31_s29 = sadd.s32 1, %s696_s13  ;;  %s40_s30 = sadd.s32 1, %s688_s11 }
  0x11   : > { %p487_p10 = pnand %p486_p9, %p755_p1  ;;  %p33_p12 = scmp.ge.s32.totalorder %s31_s29, 2 }
  0x12   : > { %p47_p13 = scmp.ne.s32.totalorder %s688_s11, %s684_s10  ;;  %p48_p0 = scmp.eq.s32.totalorder %s700_s14, 0 }
  0x13   : > { %489 = dma.hbm_to_vmem [thread:$0]  (!%p487_p10), %s123_s23, 1024, %s125_s26, [#allocation6], %s703_s27, %s703_s27, %s704_s28  }
  0x14   : > { %s900_s29 = smov (%p33_p12, %s31_s29), 0  ;;  %p797_p3 = por %p48_p0, %p47_p13 }
  0x15   : > { %p803_p5 = por %p759_p2, %p47_p13  ;;  %s37_s5 = ssub.s32 %s696_s13, %s900_s29 }
  0x16   : > { %p499_p7 = scmp.lt.s32.totalorder %s700_s14, 2  ;;  %p38_p9 = scmp.eq.s32.totalorder %s37_s5, 0 }
  0x17   : > { %s138_s6 = sand.u32 1, %s688_s11   ;;  %s468_s15 = sshll.u32 %s696_s13, 3 }
  0x18   : > { %s421_s7 = sshll.u32 %s138_s6, 3  ;;  %s148_s22 = scalar_lea.hbm %s884_s0, %s468_s15 }
  0x19   : > { %s812_s8 = scalar_select %p38_p9, %s688_s11, %s40_s30  }
  0x1a   : > { %s142_s23 = scalar_lea.vmem [#allocation2], %s421_s7  ;;  %s149_s18 = sshll.u32 %s148_s22, 4  ;;  %s150_s18 = int_to_ptr.hbm [resolvable:$true] %s149_s18 }
  0x1b   : > { %s151_s25 = sshll.u32 %s142_s23, 4  ;;  %p491_p2 = pnand %p499_p7, %p797_p3  ;;  %s152_s25 = int_to_ptr.vmem [resolvable:$true] %s151_s25 }
  0x1c   : > { %s139_s26 = scalar_lea.sflag [#allocation3], %s138_s6  ;;  %163 = sbr.rel (%p778_p8) target bundleno = 223 (0xdf), region = 28 }
  0x1d   : > { %493 = dma.hbm_to_vmem [thread:$0]  (!%p491_p2), %s150_s18, 128, %s152_s25, %s139_s26, %s703_s27, %s703_s27, %s704_s28  }
  0x1e   : > { %s826_s30 = sand.u32 (!%p778_p8), 1, %s684_s10  }
  0x1f   : > { %s425_s5 = sshll.u32 (!%p778_p8), %s826_s30, 3  ;;  %s166_s7 = scalar_lea.sflag (!%p778_p8), [#allocation3], %s826_s30 }
  0x20   : > { %s169_s15 = scalar_lea.vmem (!%p778_p8), [#allocation2], %s425_s5 }
  0x21   : > { %667 = dma.done.wait (%p765_p4), %s166_s7, 128  }
  0x22   : > { %669 = vsyncadd (%p765_p4), %s166_s7, 4294967168 }
  0x23   : > { %671 = dma.done.wait (%p755_p1), [#allocation6], 1024  }
  0x24   : > { %673 = vsyncadd (%p755_p1), [#allocation6], 4294966272  ;;  %v477_v0 = vld [vmem:[#allocation5 + $0x38] sm:$0xff]  ;;  %v476_v1 = vld [vmem:[#allocation5 + $0x30] sm:$0xff]  ;;  %s838_s17 = scalar_lea.vmem [#allocation7], %s425_s5  ;;  %v705_v9 = vmov 0.0  }
  0x25   : > { %275 = vmatpush.bf16.msra.mxu0 %v477_v0  ;;  %v475_v2 = vld [vmem:[#allocation5 + $0x28] sm:$0xff]  ;;  %v474_v3 = vld [vmem:[#allocation5 + $0x20] sm:$0xff]  ;;  %v473_v4 = vld [vmem:[#allocation5 + $0x18] sm:$0xff]  ;;  %202 = vst [vmem:[%s838_s17] sm:$0xff] %v705_v9  ;;  %s465_s19 = sshll.u32 %s692_s12, 3  ;;  %s324_s3 = sshll.u32 %s838_s17, 4  ;;  %s325_s3 = int_to_ptr.vmem [resolvable:$true] %s324_s3 }
  0x26   : > { %v472_v5 = vld [vmem:[#allocation5 + $0x10] sm:$0xff]  ;;  %v471_v6 = vld [vmem:[#allocation5 + $0x8] sm:$0xff]  ;;  %v470_v7 = vld [vmem:[#allocation5] sm:$0xff]  ;;  %s322_s28 = scalar_lea.hbm %s886_s2, %s465_s19  ;;  %s312_s12 = scalar_lea.sflag [#allocation4], %s826_s30 }
  0x27   : > { %v469_v8 = vld [vmem:[%s169_s15] sm:$0xff]  ;;  %s326_s6 = sshll.u32 %s322_s28, 4  ;;  %s634_s25 = scalar_lea.hbm %s886_s2, 16  ;;  %s327_s6 = int_to_ptr.hbm [resolvable:$true] %s326_s6 }
  0x28   : > { %s628_s16 = sshra.s32 %s327_s6, 4  ;;  %s629_s16 = int_to_ptr.hbm [resolvable:$true] %s628_s16 }
  0x29   : > { %276 = vmatpush.bf16.msra.mxu0 %v476_v1  ;;  %s630_s21 = scalar_lea.hbm %s629_s16, 8  ;;  %p635_p10 = scmp.lt.s32.totalorder %s629_s16, %s886_s2 }
  0x2a   : > { %p631_p1 = scmp.ne.s32.totalorder %s629_s16, %s630_s21  ;;  %p636_p12 = scmp.lt.s32.totalorder %s634_s25, %s630_s21 }
  0x2c   : > { %v289_v25 = vld [vmem:[%s838_s17] sm:$0x1]  ;;  %v299_v28 = vld [vmem:[%s838_s17 + $0x1] sm:$0x1]  ;;  %p632_p4 = pnand %p631_p1, %p803_p5  ;;  %p637_p13 = por %p636_p12, %p635_p10 }
  0x2d   : > { %277 = vmatpush.bf16.msra.mxu0 %v475_v2 }
  0x2e   : > { %p633_p8 = pneg %p632_p4 }
  0x30   : > { %p638_p0 = pnand %p637_p13, %p633_p8 }
  0x31   : > { %278 = vmatpush.bf16.msra.mxu0 %v474_v3 }
  0x35   : > { %279 = vmatpush.bf16.msra.mxu0 %v473_v4 }
  0x39   : > { %280 = vmatpush.bf16.msra.mxu0 %v472_v5 }
  0x3d   : > { %281 = vmatpush.bf16.msra.mxu0 %v471_v6 }
  0x41   : > { %282 = vmatpush.bf16.msra.mxu0 %v470_v7 }
  0x44   : > { %283 = vmatmul.bf16.vlgmr.msra.gmra.mxu0 %v469_v8 }
  0xc1   : > { %v284_v10 = vpop.f32.mrf.mxu0 }
  0xc2   : > { %v300_v12 = vmul.f32 %v284_v10, %v284_v10 }
  0xc9   : > { %v286_v11 = vpop.f32.mrf.mxu0 }
  0xca   : > { %v290_v13 = vadd.f32 %v286_v11, %v284_v10  ;;  %v301_v14 = vmul.f32 %v286_v11, %v286_v11 }
  0xcc   : > { %v291_v15 = vrot.slane %v290_v13, 4  ;;  %v302_v16 = vadd.f32 %v301_v14, %v300_v12 }
  0xce   : > { %v292_v17 = vadd.f32 %v291_v15, %v290_v13  ;;  %v303_v18 = vrot.slane %v302_v16, 4 }
  0xd0   : > { %v293_v19 = vrot.slane %v292_v17, 2  ;;  %v304_v20 = vadd.f32 %v303_v18, %v302_v16 }
  0xd2   : > { %v294_v21 = vadd.f32 %v293_v19, %v292_v17  ;;  %v305_v22 = vrot.slane %v304_v20, 2 }
  0xd4   : > { %v295_v23 = vrot.slane %v294_v21, 1  ;;  %v306_v24 = vadd.f32 %v305_v22, %v304_v20 }
  0xd6   : > { %v296_v26 = vadd.f32 %v295_v23, %v294_v21  ;;  %v307_v27 = vrot.slane %v306_v24, 1 }
  0xd8   : > { %v297_v29 = vadd.f32 %v296_v26, %v289_v25  ;;  %v308_v30 = vadd.f32 %v307_v27, %v306_v24 }
  0xda   : > { %v309_v31 = vadd.f32 %v308_v30, %v299_v28  ;;  %298 = vst [vmem:[%s838_s17] sm:$0x1] %v297_v29 }
  0xdc   : > { %310 = vst [vmem:[%s838_s17 + $0x1] sm:$0x1] %v309_v31 }
  0xdd   : > { %641 = shalt.err (!%p638_p0)
}
  0xde   : > { %484 = dma.vmem_to_hbm [thread:$0]  (%p803_p5), %s325_s3, 128, %s327_s6, %s312_s12  }
  0xdf PF: > { %s338_s30 = sand.u32 1, %s680_s9   ;;  %p495_p3 = pnand %p420_p11, %p770_p6 }
  0xe0   : > { %s339_s5 = scalar_lea.sflag [#allocation4], %s338_s30 }
  0xe1   : > { %p496_p7 = pneg %p495_p3 }
  0xe3   : > { %675 = dma.done.wait (%p496_p7), %s339_s5, 128  }
  0xe4   : > { %677 = vsyncadd (%p496_p7), %s339_s5, 4294967168  ;;  %s19_s14 = sadd.s32 1, %s700_s14   ;;  %s894_s9 = smov %s684_s10 }
  0xe5   : > { %p16_p9 = scmp.ge.s32.totalorder %s19_s14, 4   ;;  %s895_s10 = smov %s688_s11 }
  0xe6   : > { %s896_s11 = smov %s812_s8  ;;  %s897_s12 = smov %s696_s13 }
  0xe7   : > { %s898_s13 = smov %s900_s29  ;;  %18 = sbr.rel (!%p16_p9) target bundleno = 7 (0x7), region = 81 }
  0xec   :  { %345 = vsyncpa [#allocation3], 1 }
  0xed   :  { %347 = vsyncpa [#allocation3 + $0x1], 1 }
  0xee   :  { %348 = vsyncpa [#allocation6], 1 }
  0xef   :  { %349 = vsyncpa [#allocation4], 1 }
  0xf0   :  { %351 = vsyncpa [#allocation4 + $0x1], 1 }

</bundles_post_ra>
